<compile_context>
chip_gen: v7x
topology: tpu7x:2x2x1
jax: 0.10.0
libtpu: 0.0.40
codegen_flags: <defaults>
</compile_context>

<pallas_src>
import functools

import jax
import jax.numpy as jnp
from jax.experimental import pallas as pl
from jax.experimental.pallas import tpu as pltpu

LN_EPS = 1e-5  # PyTorch nn.LayerNorm default


def _round_up(x, m):
    return ((x + m - 1) // m) * m


def _prenorm_kernel(x_ref, gamma_ref, beta_ref, w_ref, b_ref, o_ref, *, d_orig):
    # x_ref: (TR, Dp) row tile; gamma/beta/b: (1, Dp) f32; w: (Dp, Dp) bf16.
    x = x_ref[...].astype(jnp.float32)

    # Hoisted parameter loads (one read + one broadcast each per grid step).
    gamma = gamma_ref[...]
    beta = beta_ref[...]
    bias = b_ref[...]

    # --- LayerNorm over the (unpadded) feature axis, single reduction pass ---
    # Padded feature columns of x are zero, so sums over Dp equal sums over D.
    inv_d = jnp.float32(1.0 / d_orig)
    sum_x = jnp.sum(x, axis=-1, keepdims=True)
    sum_x2 = jnp.sum(x * x, axis=-1, keepdims=True)
    mean = sum_x * inv_d
    var = jnp.maximum(sum_x2 * inv_d - mean * mean, 0.0)
    inv_std = jax.lax.rsqrt(var + LN_EPS)
    # Padded gamma/beta columns are zero -> padded columns of y are exactly 0,
    # so the padded rows/cols of W contribute nothing to real outputs.
    y = (x - mean) * inv_std * gamma + beta

    # --- fn(.) = Linear(dim -> dim): bf16 operands on the MXU, f32 accumulate.
    out = jnp.dot(y.astype(jnp.bfloat16), w_ref[...],
                  preferred_element_type=jnp.float32)
    out = out + bias
    o_ref[...] = out.astype(o_ref.dtype)


def prenorm(x, gamma, beta, w, b, *, row_tile=None):
    """x: (B, T, D) -> fn(LayerNorm(x)) with fn(y) = y @ w + b."""
    B, T, D = x.shape
    R = B * T

    # ---- lane-dense feature padding (multiple of 128) ------------------------
    Dp = _round_up(D, 128)
    x2 = x.reshape(R, D)
    if Dp != D:
        pad_d = Dp - D
        x2 = jnp.pad(x2, ((0, 0), (0, pad_d)))
        gamma_p = jnp.pad(gamma, (0, pad_d))
        beta_p = jnp.pad(beta, (0, pad_d))
        w_p = jnp.pad(w, ((0, pad_d), (0, pad_d)))
        b_p = jnp.pad(b, (0, pad_d))
    else:
        gamma_p, beta_p, w_p, b_p = gamma, beta, w, b

    # ---- row tiling -----------------------------------------------------------
    if row_tile is None:
        target = 512                       # amortize ~0.35us/step grid overhead
        if R <= target:
            target = max(8, -(-R // 2))    # >=2 grid steps -> both v7x TCs busy
        row_tile = target
    row_tile = _round_up(row_tile, 8)      # f32 sublane alignment
    Rp = _round_up(R, row_tile)
    if Rp != R:
        x2 = jnp.pad(x2, ((0, Rp - R), (0, 0)))
    grid = (Rp // row_tile,)

    gamma2 = gamma_p.reshape(1, Dp).astype(jnp.float32)
    beta2 = beta_p.reshape(1, Dp).astype(jnp.float32)
    b2 = b_p.reshape(1, Dp).astype(jnp.float32)
    w_bf16 = w_p.astype(jnp.bfloat16)      # resident weight in bf16 (MXU-native)

    # ---- VMEM budget: 2x in tile + 2x out tile + resident W + params ---------
    in_bytes = x2.dtype.itemsize
    out_bytes = x.dtype.itemsize
    need = (2 * row_tile * Dp * in_bytes
            + 2 * row_tile * Dp * out_bytes
            + Dp * Dp * 2
            + 3 * Dp * 4)
    vmem_limit = min(60 * 1024 * 1024, max(2 * need, 16 * 1024 * 1024))

    kernel = functools.partial(_prenorm_kernel, d_orig=D)

    out2 = pl.pallas_call(
        kernel,
        out_shape=jax.ShapeDtypeStruct((Rp, Dp), x.dtype),
        grid_spec=pltpu.PrefetchScalarGridSpec(
            num_scalar_prefetch=0,
            grid=grid,
            in_specs=[
                pl.BlockSpec((row_tile, Dp), lambda i: (i, 0)),  # x rows
                pl.BlockSpec((1, Dp), lambda i: (0, 0)),         # gamma
                pl.BlockSpec((1, Dp), lambda i: (0, 0)),         # beta
                pl.BlockSpec((Dp, Dp), lambda i: (0, 0)),        # fn weight (bf16)
                pl.BlockSpec((1, Dp), lambda i: (0, 0)),         # fn bias
            ],
            out_specs=pl.BlockSpec((row_tile, Dp), lambda i: (i, 0)),
        ),
        compiler_params=pltpu.CompilerParams(
            dimension_semantics=("parallel",),
            vmem_limit_bytes=int(vmem_limit)),
    )(x2, gamma2, beta2, w_bf16, b2)

    return out2[:R, :D].reshape(B, T, D)


def _reference(x, gamma, beta, w, b):
    # Same math, same bf16 matmul operand precision as the kernel.
    xf = x.astype(jnp.float32)
    mean = jnp.mean(xf, axis=-1, keepdims=True)
    var = jnp.mean((xf - mean) ** 2, axis=-1, keepdims=True)
    y = (xf - mean) * jax.lax.rsqrt(var + LN_EPS) * gamma + beta
    out = jnp.dot(y.astype(jnp.bfloat16), w.astype(jnp.bfloat16),
                  preferred_element_type=jnp.float32) + b
    return out.astype(x.dtype)


if __name__ == "__main__":
    B, T, D = 2, 8, 32  # batch, sequence length, hidden dim
    key = jax.random.PRNGKey(0)
    kx, kg, kb, kw, kbias = jax.random.split(key, 5)

    x = jax.random.normal(kx, (B, T, D), dtype=jnp.float32)

    # nn.LayerNorm(dim) params: weight=ones, bias=zeros at init; perturb
    # deterministically so the affine part is actually exercised.
    gamma = jnp.ones((D,), jnp.float32) + 0.1 * jax.random.normal(kg, (D,), jnp.float32)
    beta = 0.1 * jax.random.normal(kb, (D,), jnp.float32)

    # fn = Linear(D, D), deterministic init.
    w = jax.random.normal(kw, (D, D), jnp.float32) / jnp.sqrt(D)
    b = 0.1 * jax.random.normal(kbias, (D,), jnp.float32)

    out = prenorm(x, gamma, beta, w, b)
    out = jax.block_until_ready(out)

    ref = _reference(x, gamma, beta, w, b)
    assert out.shape == (B, T, D)
    assert jnp.allclose(out, ref, atol=5e-2, rtol=5e-2), "mismatch vs reference"

    print("KERNEL_OK")
</pallas_src>

<mosaic_0001>
module attributes {stable_mosaic.version = 11 : i64} {
  func.func @_prenorm_kernel(%arg0: i32, %arg1: memref<8x128xf32, #tpu.memory_space<vmem>>, %arg2: memref<1x128xf32, #tpu.memory_space<vmem>>, %arg3: memref<1x128xf32, #tpu.memory_space<vmem>>, %arg4: memref<128x128xbf16, #tpu.memory_space<vmem>>, %arg5: memref<1x128xf32, #tpu.memory_space<vmem>>, %arg6: memref<8x128xf32, #tpu.memory_space<vmem>>) attributes {dimension_semantics = [#tpu.dimension_semantics<parallel>], iteration_bounds = array<i64: 2>, scalar_prefetch = 0 : i64, scratch_operands = 0 : i64, tpu.core_type = #tpu.core_type<tc>, window_params = [{transform_indices = @transform_0, window_bounds = array<i64: 8, 128>}, {pipeline_mode = #tpu.pipeline_mode<synchronous>, transform_indices = @transform_1, window_bounds = array<i64: 1, 128>}, {pipeline_mode = #tpu.pipeline_mode<synchronous>, transform_indices = @transform_2, window_bounds = array<i64: 1, 128>}, {pipeline_mode = #tpu.pipeline_mode<synchronous>, transform_indices = @transform_3, window_bounds = array<i64: 128, 128>}, {pipeline_mode = #tpu.pipeline_mode<synchronous>, transform_indices = @transform_4, window_bounds = array<i64: 1, 128>}, {transform_indices = @transform_5, window_bounds = array<i64: 8, 128>}]} {
    %c0 = arith.constant 0 : index
    %c0_0 = arith.constant 0 : index
    %0 = vector.load %arg1[%c0, %c0_0] : memref<8x128xf32, #tpu.memory_space<vmem>>, vector<8x128xf32>
    %c0_1 = arith.constant 0 : index
    %c0_2 = arith.constant 0 : index
    %1 = vector.load %arg2[%c0_1, %c0_2] : memref<1x128xf32, #tpu.memory_space<vmem>>, vector<1x128xf32>
    %c0_3 = arith.constant 0 : index
    %c0_4 = arith.constant 0 : index
    %2 = vector.load %arg3[%c0_3, %c0_4] : memref<1x128xf32, #tpu.memory_space<vmem>>, vector<1x128xf32>
    %c0_5 = arith.constant 0 : index
    %c0_6 = arith.constant 0 : index
    %3 = vector.load %arg5[%c0_5, %c0_6] : memref<1x128xf32, #tpu.memory_space<vmem>>, vector<1x128xf32>
    %cst = arith.constant dense<0.000000e+00> : vector<8xf32>
    %4 = vector.multi_reduction <add>, %0, %cst [1] : vector<8x128xf32> to vector<8xf32>
    %5 = vector.shape_cast %4 : vector<8xf32> to vector<8x1xf32>
    %6 = arith.mulf %0, %0 : vector<8x128xf32>
    %cst_7 = arith.constant dense<0.000000e+00> : vector<8xf32>
    %7 = vector.multi_reduction <add>, %6, %cst_7 [1] : vector<8x128xf32> to vector<8xf32>
    %8 = vector.shape_cast %7 : vector<8xf32> to vector<8x1xf32>
    %cst_8 = arith.constant 3.125000e-02 : f32
    %9 = vector.broadcast %cst_8 : f32 to vector<8x1xf32>
    %10 = arith.mulf %5, %9 : vector<8x1xf32>
    %cst_9 = arith.constant 3.125000e-02 : f32
    %11 = vector.broadcast %cst_9 : f32 to vector<8x1xf32>
    %12 = arith.mulf %8, %11 : vector<8x1xf32>
    %13 = arith.mulf %10, %10 : vector<8x1xf32>
    %14 = arith.subf %12, %13 : vector<8x1xf32>
    %cst_10 = arith.constant 0.000000e+00 : f32
    %15 = vector.broadcast %cst_10 : f32 to vector<8x1xf32>
    %16 = arith.maximumf %14, %15 : vector<8x1xf32>
    %cst_11 = arith.constant 9.99999974E-6 : f32
    %17 = vector.broadcast %cst_11 : f32 to vector<8x1xf32>
    %18 = arith.addf %16, %17 : vector<8x1xf32>
    %19 = math.rsqrt %18 : vector<8x1xf32>
    %20 = vector.broadcast %10 : vector<8x1xf32> to vector<8x128xf32>
    %21 = arith.subf %0, %20 : vector<8x128xf32>
    %22 = vector.broadcast %19 : vector<8x1xf32> to vector<8x128xf32>
    %23 = arith.mulf %21, %22 : vector<8x128xf32>
    %24 = vector.broadcast %1 : vector<1x128xf32> to vector<8x128xf32>
    %25 = arith.mulf %23, %24 : vector<8x128xf32>
    %26 = vector.broadcast %2 : vector<1x128xf32> to vector<8x128xf32>
    %27 = arith.addf %25, %26 : vector<8x128xf32>
    %28 = arith.truncf %27 : vector<8x128xf32> to vector<8x128xbf16>
    %c0_12 = arith.constant 0 : index
    %c0_13 = arith.constant 0 : index
    %29 = vector.load %arg4[%c0_12, %c0_13] : memref<128x128xbf16, #tpu.memory_space<vmem>>, vector<128x128xbf16>
    %cst_14 = arith.constant dense<0.000000e+00> : vector<8x128xf32>
    %30 = tpu.matmul %28, %29, %cst_14 {dimension_numbers = #tpu.dot_dimension_numbers<[1], [0], [0], [1], [0, 0, 1, 1], [], []>} : vector<8x128xbf16>, vector<128x128xbf16>, vector<8x128xf32> -> vector<8x128xf32>
    %31 = vector.broadcast %3 : vector<1x128xf32> to vector<8x128xf32>
    %32 = arith.addf %30, %31 : vector<8x128xf32>
    %c0_15 = arith.constant 0 : index
    %c0_16 = arith.constant 0 : index
    %33 = vector.load %arg6[%c0_15, %c0_16] : memref<8x128xf32, #tpu.memory_space<vmem>>, vector<8x128xf32>
    tpu.vector_store %arg6[%c0_15, %c0_16], %32 {strides = array<i32>} : memref<8x128xf32, #tpu.memory_space<vmem>>, vector<8x128xf32>,
    return
  }
  func.func @transform_0(%arg0: i32) -> (i32, i32) {
    %c0_i32 = arith.constant 0 : i32
    %c0_i32_0 = arith.constant 0 : i32
    return %arg0, %c0_i32 : i32, i32
  }
  func.func @transform_1(%arg0: i32) -> (i32, i32) {
    %c0_i32 = arith.constant 0 : i32
    %c0_i32_0 = arith.constant 0 : i32
    %c0_i32_1 = arith.constant 0 : i32
    return %c0_i32, %c0_i32_0 : i32, i32
  }
  func.func @transform_2(%arg0: i32) -> (i32, i32) {
    %c0_i32 = arith.constant 0 : i32
    %c0_i32_0 = arith.constant 0 : i32
    %c0_i32_1 = arith.constant 0 : i32
    return %c0_i32, %c0_i32_0 : i32, i32
  }
  func.func @transform_3(%arg0: i32) -> (i32, i32) {
    %c0_i32 = arith.constant 0 : i32
    %c0_i32_0 = arith.constant 0 : i32
    %c0_i32_1 = arith.constant 0 : i32
    return %c0_i32, %c0_i32_0 : i32, i32
  }
  func.func @transform_4(%arg0: i32) -> (i32, i32) {
    %c0_i32 = arith.constant 0 : i32
    %c0_i32_0 = arith.constant 0 : i32
    %c0_i32_1 = arith.constant 0 : i32
    return %c0_i32, %c0_i32_0 : i32, i32
  }
  func.func @transform_5(%arg0: i32) -> (i32, i32) {
    %c0_i32 = arith.constant 0 : i32
    %c0_i32_0 = arith.constant 0 : i32
    return %arg0, %c0_i32 : i32, i32
  }
}

</mosaic_0001>

<bundles_post_ra>
// kernel: tpu_custom_call.1
= control target key start
LH: loop header
LB: loop body
LE: loop exit
PB: predicated region body
PF: predicated region fallthrough
CT: control target
= control target key end

     0   :  { %10 = vsyncpa [#allocation3], 0  ;;  %s995_s0 = inlined_call_operand.hbm [shape: f32[16,128], index: 0, kind: input, shape index: {}]   ;;  %s996_s1 = inlined_call_operand.vmem [shape: f32[1,128], index: 1, kind: input, shape index: {}]   ;;  %s997_s2 = inlined_call_operand.vmem [shape: f32[1,128], index: 2, kind: input, shape index: {}]   ;;  %s998_s3 = inlined_call_operand.hbm [shape: bf16[128,128], index: 3, kind: input, shape index: {}]   ;;  %s999_s4 = inlined_call_operand.vmem [shape: f32[1,128], index: 4, kind: input, shape index: {}]   ;;  %s1000_s5 = inlined_call_operand.hbm [shape: f32[16,128], index: 5, kind: output, shape index: {}]  }
   0x1   :  { %12 = vsyncpa [#allocation3 + $0x1], 0 }
   0x2   :  { %13 = vsyncpa [#allocation6], 0 }
   0x3   :  { %14 = vsyncpa [#allocation4], 0 }
   0x4   :  { %16 = vsyncpa [#allocation4 + $0x1], 0  ;;  %s786_s18 = smov 0   ;;  %s788_s19 = smov 0  }
   0x5   :  { %s790_s20 = smov 0   ;;  %s792_s21 = smov 0  }
   0x6 LB: > { %s807_s22 = sadd.s32 4294967295, %s747_s21   ;;  %s494_s23 = sadd.s32 4294967294, %s747_s21   ;;  %s747_s21 = sphi %s792_s21, %s1020_s21   ;;  %s743_s20 = sphi %s790_s20, %s1019_s20   ;;  %s739_s19 = sphi %s788_s19, %s1018_s19   ;;  %s735_s18 = sphi %s786_s18, %s1017_s18  }
   0x7   : > { %p42_p0 = scmp.ne.s32.totalorder %s739_s19, %s735_s18  ;;  %p1001_p1 = scmp.eq.s32.totalorder %s807_s22, 0 }
   0x8   : > { %p156_p3 = scmp.eq.s32.totalorder %s494_s23, 1  ;;  %p495_p5 = scmp.ge.s32.totalorder %s747_s21, 1 }
   0x9   : > { %p816_p4 = por %p1001_p1, %p42_p0  ;;  %p163_p7 = scmp.lt.s32.totalorder %s747_s21, 3 }
   0xa   : > { %p821_p6 = por %p156_p3, %p42_p0  ;;  %s749_s27 = smov [#allocation5]  }
   0xb   : > { %s1004_s24 = scalar_select %p816_p4, 1, 0 }
   0xc   : > { %s1005_s25 = scalar_select %p821_p6, 1, 0 }
   0xd   : > { %p826_p8 = pnand %p495_p5, %p163_p7  ;;  %s181_s28 = sshll.u32 %s749_s27, 4  ;;  %s830_s28 = int_to_ptr.vmem [resolvable:$true] %s181_s28 }
   0xe   : > { %s842_s30 = sadd.s32 1, %s747_s21   ;;  %s29_s6 = sadd.s32 1, %s743_s20 }
   0xf   : > { %s1006_s26 = scalar_select %p826_p8, 1, 0 }
  0x10   : > { %p556_p9 = pneg %p826_p8  ;;  %s26_s7 = ssub.s32 %s747_s21, %s842_s30 }
  0x11   : > { %s619_s10 = scalar_lea.hbm %s998_s3, 1024 }
  0x12   : > { %p837_p11 = pnand %p556_p9, %p1001_p1  ;;  %p620_p12 = scmp.ne.s32.totalorder %s998_s3, %s619_s10 }
  0x13   : > { %p626_p5 = scmp.lt.u32.totalorder %s619_s10, %s998_s3 }
  0x14   : > { %p621_p13 = pneg %p837_p11 }
  0x16   : > { %p622_p0 = pnand %p621_p13, %p620_p12 }
  0x18   : > { %p623_p3 = pneg %p622_p0 }
  0x1a   : > { %p628_p7 = pnand %p626_p5, %p623_p3 }
  0x1c   : > { %631 = shalt.err (!%p628_p7)
}
  0x1d   : > { %s632_s15 = scalar_lea.vmem %s830_s28, 1024  ;;  %p640_p2 = scmp.lt.s32.totalorder %s830_s28, %s830_s28 }
  0x1e   : > { %p633_p9 = scmp.ne.s32.totalorder %s830_s28, %s632_s15  ;;  %p641_p6 = scmp.lt.s32.totalorder %s632_s15, %s632_s15 }
  0x20   : > { %p635_p10 = pnand %p633_p9, %p621_p13  ;;  %p642_p4 = por %p641_p6, %p640_p2 }
  0x22   : > { %p636_p1 = pneg %p635_p10 }
  0x24   : > { %p643_p8 = pnand %p642_p4, %p636_p1 }
  0x26   : > { %646 = shalt.err (!%p643_p8)
}
  0x27   : > { %s750_s16 = smov 64   ;;  %s751_s17 = smov 4  }
  0x28   : > { %559 = dma.hbm_to_vmem [thread:$0]  (!%p837_p11), %s998_s3, 1024, %s830_s28, [#allocation6], %s750_s16, %s750_s16, %s751_s17  }
  0x29   : > { %p27_p2 = scmp.eq.s32.totalorder %s26_s7, 0  ;;  %p36_p1 = scmp.ne.s32.totalorder %s743_s20, %s739_s19 }
  0x2a   : > { %p37_p4 = scmp.eq.s32.totalorder %s747_s21, 0  ;;  %p569_p6 = scmp.lt.s32.totalorder %s747_s21, 2 }
  0x2b   : > { %s873_s8 = scalar_select %p27_p2, %s743_s20, %s29_s6  }
  0x2c   : > { %p38_p8 = por %p37_p4, %p36_p1  ;;  %p1008_p10 = scmp.eq.s32.totalorder %s807_s22, 1 }
  0x2d   : > { %s198_s10 = sand.u32 1, %s743_s20   ;;  %s499_s11 = sshll.u32 %s747_s21, 7 }
  0x2e   : > { %p877_p12 = por %p1008_p10, %p36_p1  ;;  %s498_s12 = sshll.u32 %s198_s10, 3 }
  0x2f   : > { %s886_s14 = scalar_lea.hbm %s995_s0, %s499_s11  ;;  %s202_s28 = scalar_lea.vmem [#allocation2], %s498_s12 }
  0x30   : > { %s209_s6 = sshll.u32 %s202_s28, 4  ;;  %p888_p11 = pnand %p569_p6, %p38_p8  ;;  %s892_s6 = int_to_ptr.vmem [resolvable:$true] %s209_s6 }
  0x31   : > { %s199_s15 = scalar_lea.sflag [#allocation3], %s198_s10  ;;  %s647_s16 = scalar_lea.hbm %s886_s14, 128 }
  0x32   : > { %p648_p13 = scmp.ne.s32.totalorder %s886_s14, %s647_s16  ;;  %p649_p0 = pneg %p888_p11 }
  0x33   : > { %s652_s27 = scalar_lea.hbm %s995_s0, 256  ;;  %p653_p7 = scmp.lt.u32.totalorder %s886_s14, %s995_s0 }
  0x34   : > { %p650_p3 = pnand %p649_p0, %p648_p13  ;;  %p654_p9 = scmp.lt.u32.totalorder %s652_s27, %s647_s16 }
  0x35   : > { %p656_p1 = scmp.lt.u32.totalorder %s647_s16, %s886_s14 }
  0x36   : > { %p651_p5 = pneg %p650_p3  ;;  %p655_p2 = por %p654_p9, %p653_p7 }
  0x38   : > { %p657_p4 = por %p656_p1, %p655_p2 }
  0x3a   : > { %p658_p6 = pnand %p657_p4, %p651_p5 }
  0x3c   : > { %661 = shalt.err (!%p658_p6)
}
  0x3d   : > { %s662_s10 = scalar_lea.vmem %s892_s6, 128  ;;  %s752_s29 = smov [#allocation2]  }
  0x3e   : > { %p663_p8 = scmp.ne.s32.totalorder %s892_s6, %s662_s10  ;;  %s667_s13 = sshll.u32 %s752_s29, 4  ;;  %s668_s13 = int_to_ptr.vmem [resolvable:$false] %s667_s13 }
  0x3f   : > { %s669_s28 = scalar_lea.vmem %s668_s13, 256  ;;  %p670_p3 = scmp.lt.s32.totalorder %s892_s6, %s668_s13 }
  0x40   : > { %p665_p10 = pnand %p663_p8, %p649_p0  ;;  %p671_p7 = scmp.lt.s32.totalorder %s669_s28, %s662_s10 }
  0x42   : > { %p666_p13 = pneg %p665_p10  ;;  %p672_p9 = por %p671_p7, %p670_p3 }
  0x44   : > { %p673_p2 = pnand %p672_p9, %p666_p13 }
  0x46   : > { %676 = shalt.err (!%p673_p2)
}
  0x47   : > { %563 = dma.hbm_to_vmem [thread:$0]  (!%p888_p11), %s886_s14, 128, %s892_s6, %s199_s15  }
  0x48   : > { %p1011_p5 = scmp.ne.s32.totalorder %s1006_s26, 0 }
  0x49   : > { %s922_s16 = sand.u32 (!%p1011_p5), 1, %s739_s19   ;;  %p1012_p0 = scmp.ne.s32.totalorder (!%p1011_p5), %s1004_s24, 0 }
  0x4a   : > { %218 = sbr.rel (%p1011_p5) target bundleno = 487 (0x1e7), region = 40  ;;  %s501_s17 = sshll.u32 (!%p1011_p5), %s922_s16, 3 }
  0x4b   : > { %s221_s23 = scalar_lea.sflag (!%p1011_p5), [#allocation3], %s922_s16  ;;  %s224_s27 = scalar_lea.vmem (!%p1011_p5), [#allocation2], %s501_s17 }
  0x51   : > { %722 = dma.done.wait (%p1012_p0), %s221_s23, 128  }
  0x52   : > { %724 = vsyncadd (%p1012_p0), %s221_s23, 4294967168  ;;  %p1013_p11 = scmp.eq.s32.totalorder %s807_s22, 0 }
  0x54   : > { %726 = dma.done.wait (%p1013_p11), [#allocation6], 1024   ;;  %p1014_p1 = pmov %p1013_p11 }
  0x55   : > { %v753_v0 = vmov 0.0   ;;  %v256_v1 = vld [vmem:[%s224_s27] sm:$0xff]  ;;  %v609_v3 = vld [vmem:[#allocation5] sm:$0xff]   ;;  %v610_v4 = vld [vmem:[#allocation5 + $0x8] sm:$0xff]   ;;  %vm754_vm0 = vmmov 0   ;;  %s516_s11 = sshll.u32 %s807_s22, 7 }
  0x56   : > { %728 = vsyncadd (%p1014_p1), [#allocation6], 4294966272  ;;  %528 = vmatprep.subr.bf16.mxu0 %v753_v0  ;;  %260 = vadd.xlane.f32.xlu0 %v256_v1  ;;  %v262_v2 = vmul.f32 %v256_v1, %v256_v1  ;;  %v611_v5 = vld [vmem:[#allocation5 + $0x10] sm:$0xff]   ;;  %v612_v6 = vld [vmem:[#allocation5 + $0x18] sm:$0xff]   ;;  %s254_s12 = scalar_lea.vmem [#allocation7], %s501_s17  ;;  %s951_s28 = scalar_lea.hbm %s1000_s5, %s516_s11 }
  0x57   : > { %529 = vmatpush3.bf16.msra.mxu0 %v609_v3  ;;  %v613_v7 = vld [vmem:[#allocation5 + $0x20] sm:$0xff]   ;;  %544 = vmatprep.mubr.msk.bf16.mxu0 %vm754_vm0, %v753_v0  ;;  %v614_v8 = vld [vmem:[#allocation5 + $0x28] sm:$0xff]   ;;  %v615_v9 = vld [vmem:[#allocation5 + $0x30] sm:$0xff]   ;;  %s414_s10 = sshll.u32 %s254_s12, 4  ;;  %s401_s22 = scalar_lea.sflag [#allocation4], %s922_s16  ;;  %s953_s10 = int_to_ptr.vmem [resolvable:$true] %s414_s10 }
  0x58   : > { %530 = vmatprep.subr.bf16.mxu0 %v753_v0  ;;  %v616_v10 = vld [vmem:[#allocation5 + $0x38] sm:$0xff]   ;;  %v504_v21 = vld [vmem:[%s996_s1] ss:$0 sm:$0xff]  ;;  %s677_s23 = scalar_lea.vmem %s953_s10, 128  ;;  %s755_s17 = smov [#allocation7]  }
  0x59   : > { %v505_v23 = vld [vmem:[%s997_s2] ss:$0 sm:$0xff]  ;;  %p678_p4 = scmp.ne.s32.totalorder %s953_s10, %s677_s23  ;;  %s681_s27 = sshll.u32 %s755_s17, 4  ;;  %s682_s27 = int_to_ptr.vmem [resolvable:$false] %s681_s27 }
  0x5a   : > { %263 = vadd.xlane.f32.xlu0 %v262_v2  ;;  %v506_v27 = vld [vmem:[%s999_s4] ss:$0 sm:$0xff]  ;;  %s683_s24 = scalar_lea.vmem %s682_s27, 256  ;;  %p684_p10 = scmp.lt.s32.totalorder %s953_s10, %s682_s27 }
  0x5b   : > { %531 = vmatpush3.bf16.msra.mxu0 %v610_v4  ;;  %p679_p6 = pnand %p678_p4, %p877_p12  ;;  %p685_p13 = scmp.lt.s32.totalorder %s683_s24, %s677_s23 }
  0x5c   : > { %532 = vmatprep.subr.bf16.mxu0 %v753_v0 }
  0x5d   : > { %p680_p8 = pneg %p679_p6  ;;  %p686_p3 = por %p685_p13, %p684_p10 }
  0x5f   : > { %533 = vmatpush3.bf16.msra.mxu0 %v611_v5  ;;  %p687_p7 = pnand %p686_p3, %p680_p8 }
  0x60   : > { %534 = vmatprep.subr.bf16.mxu0 %v753_v0 }
  0x63   : > { %535 = vmatpush3.bf16.msra.mxu0 %v612_v6 }
  0x64   : > { %536 = vmatprep.subr.bf16.mxu0 %v753_v0 }
  0x67   : > { %537 = vmatpush3.bf16.msra.mxu0 %v613_v7 }
  0x68   : > { %538 = vmatprep.subr.bf16.mxu0 %v753_v0 }
  0x6b   : > { %539 = vmatpush3.bf16.msra.mxu0 %v614_v8 }
  0x6c   : > { %540 = vmatprep.subr.bf16.mxu0 %v753_v0 }
  0x6f   : > { %541 = vmatpush3.bf16.msra.mxu0 %v615_v9 }
  0x70   : > { %542 = vmatprep.subr.bf16.mxu0 %v753_v0 }
  0x73   : > { %543 = vmatpush3.bf16.msra.mxu0 %v616_v10 }
  0xe3   : > { %v261_v11 = vpop.xlane.xlu0 %260 }
  0xe4   : > { %v265_v12 = vmul.f32 0.03125, %v261_v11 }
  0xe6   : > { %v267_v14 = vmul.f32 %v265_v12, %v265_v12  ;;  %v272_v19 = vsub.f32 %v256_v1, %v265_v12 }
  0xe7   : > { %v264_v13 = vpop.xlane.xlu0 %263 }
  0xe8   : > { %v266_v15 = vmul.f32 0.03125, %v264_v13 }
  0xea   : > { %v268_v16 = vsub.f32 %v266_v15, %v267_v14 }
  0xec   : > { %v269_v17 = vmax.f32 %v268_v16, 0.0 }
  0xee   : > { %v270_v18 = vadd.f32 1e-05, %v269_v17 }
  0xf0   : > { %617 = vrsqrt.f32 %v270_v18 }
  0xfa   : > { %v618_v20 = vpop.eup %617 }
  0xfb   : > { %v273_v22 = vmul.f32 %v618_v20, %v272_v19 }
  0xfd   : > { %v280_v24 = vmul.f32 %v504_v21, %v273_v22 }
  0xff   : > { %v287_v25 = vadd.f32 %v505_v23, %v280_v24 }
 0x101   : > { %v288_v26 = vpack.c.bf16 %v287_v25, %v287_v25 }
 0x103   : > { %545 = vmatmul.mubr.bf16.vlgmr.msra.gmra.mrb[0].mxu0 %v288_v26 }
 0x1d6   : > { %v393_v28 = vpop.f32.mrb[0].mxu0 }
 0x1d7   : > { %v394_v29 = vadd.f32 %v506_v27, %v393_v28  ;;  %v546_v30 = vpop.f32.mrb[1].mxu0 }
 0x1d8   : > { %v396_v31 = vpop.f32.mrb[2].mxu0 }
 0x1d9   : > { %399 = vst [vmem:[%s254_s12] sm:$0xff] %v394_v29  ;;  %v547_v32 = vpop.f32.mrb[3].mxu0 }
 0x1da   : > { %690 = shalt.err (!%p687_p7)
}
 0x1db   : > { %s691_s16 = scalar_lea.hbm %s951_s28, 128  ;;  %s695_s6 = scalar_lea.hbm %s1000_s5, 256 }
 0x1dc   : > { %p692_p9 = scmp.ne.s32.totalorder %s951_s28, %s691_s16  ;;  %p696_p0 = scmp.lt.u32.totalorder %s951_s28, %s1000_s5 }
 0x1dd   : > { %p697_p11 = scmp.lt.u32.totalorder %s695_s6, %s691_s16  ;;  %p699_p4 = scmp.lt.u32.totalorder %s691_s16, %s951_s28 }
 0x1de   : > { %p693_p2 = pnand %p692_p9, %p877_p12 }
 0x1df   : > { %p698_p1 = por %p697_p11, %p696_p0 }
 0x1e0   : > { %p694_p5 = pneg %p693_p2 }
 0x1e1   : > { %p700_p6 = por %p699_p4, %p698_p1 }
 0x1e3   : > { %p701_p8 = pnand %p700_p6, %p694_p5 }
 0x1e5   : > { %704 = shalt.err (!%p701_p8)
}
 0x1e6   : > { %554 = dma.vmem_to_hbm [thread:$0]  (%p877_p12), %s953_s10, 128, %s951_s28, %s401_s22  }
 0x1e7 PF: > { %s426_s11 = sand.u32 1, %s735_s18   ;;  %p1015_p10 = scmp.ne.s32.totalorder %s1005_s25, 0 }
 0x1e8   : > { %p1016_p13 = scmp.ge.s32.totalorder %s747_s21, 2  ;;  %s427_s12 = scalar_lea.sflag [#allocation4], %s426_s11 }
 0x1ea   : > { %p565_p3 = pnand %p1016_p13, %p1015_p10 }
 0x1ec   : > { %730 = dma.done.wait (!%p565_p3), %s427_s12, 128  }
 0x1ed   : > { %732 = vsyncadd (!%p565_p3), %s427_s12, 4294967168  ;;  %p19_p7 = scmp.ge.s32.totalorder %s842_s30, 4   ;;  %s1017_s18 = smov %s739_s19 }
 0x1ee   : > { %s1018_s19 = smov %s743_s20  ;;  %s1019_s20 = smov %s873_s8 }
 0x1ef   : > { %s1020_s21 = smov %s842_s30  ;;  %21 = sbr.rel (!%p19_p7) target bundleno = 6 (0x6), region = 89 }
 0x1f6   :  { %432 = vsyncpa [#allocation3], 1 }
 0x1f7   :  { %434 = vsyncpa [#allocation3 + $0x1], 1 }
 0x1f8   :  { %435 = vsyncpa [#allocation6], 1 }
 0x1f9   :  { %436 = vsyncpa [#allocation4], 1 }
 0x1fa   :  { %438 = vsyncpa [#allocation4 + $0x1], 1 }

</bundles_post_ra>
